<compile_context>
chip_gen: v7x
topology: tpu7x:2x2x1
jax: 0.10.0
libtpu: 0.0.40
codegen_flags: <defaults>
</compile_context>

<pallas_src>
import functools
import math

import numpy as np

import jax
import jax.numpy as jnp
from jax.experimental import pallas as pl
from jax.experimental.pallas import tpu as pltpu


# ----------------------------------------------------------------------------------
# Hardware-aware helpers
# ----------------------------------------------------------------------------------
def _vmem_limit_bytes():
    """Generation-aware scoped-VMEM limit (leave headroom below physical VMEM)."""
    try:
        info = pltpu.get_tpu_info()
        cap = int(getattr(info, "vmem_capacity_bytes", 0) or 0)
    except Exception:
        cap = 0
    if cap >= 128 * 1024 * 1024:        # v5e / v6e: 128 MiB physical
        return 96 * 1024 * 1024
    if cap > 0:                          # v7x: 64 MiB physical per TensorCore
        return int(cap * 0.7)
    return 48 * 1024 * 1024              # unknown backend (e.g. interpret mode)


def _num_tensorcores_per_chip():
    """2 TensorCores per chip on v7x, 1 on v5e/v6e (best-effort probe)."""
    try:
        kind = str(jax.devices()[0].device_kind).lower()
    except Exception:
        return 1
    return 2 if "v7" in kind else 1


def _choose_bt(B, Lq, per_batch_bytes, vmem_budget, num_cores, target_rows=512):
    """Batch-tile size: fold batch into the projection-matmul M dim (target ~512 rows),
    bounded by the VMEM budget; reserve >= 2 grid steps only when 2 TCs exist."""
    divisors = [d for d in range(1, B + 1) if B % d == 0]
    row_cap = max(1, target_rows // max(Lq, 1))
    cand = [d for d in divisors
            if d <= row_cap and d * per_batch_bytes <= max(vmem_budget, 0)]
    bt = max(cand) if cand else 1
    if num_cores >= 2 and B >= 2 and B // bt < 2:
        smaller = [d for d in divisors if d < bt]
        if smaller:
            bt = max(smaller)
    return bt


# ----------------------------------------------------------------------------------
# Kernels
# ----------------------------------------------------------------------------------
def _make_full_kernel(Bt, Lq, Lk, H, proj_values, has_mask, return_alphas, mxu_dtype):
    """Single Lk step per grid point: full (Bt, Lq, Lk) softmax, optional alphas out."""

    def kernel(*refs):
        i = 0
        q_ref = refs[i]; i += 1
        k_ref = refs[i]; i += 1
        mask_ref = None
        if has_mask:
            mask_ref = refs[i]; i += 1
        wq_ref, bq_ref, wkv_ref, bkv_ref = refs[i:i + 4]; i += 4
        ctx_ref = refs[i]; i += 1
        alphas_ref = refs[i] if return_alphas else None

        Din = q_ref.shape[-1]

        # Fold the Bt batch elements into M for the projection matmuls.
        q2 = q_ref[...].reshape(Bt * Lq, Din).astype(mxu_dtype)
        k2 = k_ref[...].reshape(Bt * Lk, Din).astype(mxu_dtype)

        # proj_query (1/sqrt(d_k) already folded into wq/bq by the wrapper).
        pq = (jnp.dot(q2, wq_ref[...], preferred_element_type=jnp.float32)
              + bq_ref[...]).reshape(Bt, Lq, H)

        # proj_key (+ proj_value when requested) as ONE fused MXU matmul.
        pkv = jnp.dot(k2, wkv_ref[...], preferred_element_type=jnp.float32) + bkv_ref[...]
        if proj_values:
            pk = pkv[:, :H].reshape(Bt, Lk, H)
            v3 = pkv[:, H:].reshape(Bt, Lk, H).astype(mxu_dtype)
        else:
            pk = pkv.reshape(Bt, Lk, H)
            v3 = k_ref[...].astype(mxu_dtype)       # values = keys

        # scores = proj_query @ proj_keys^T (scale pre-folded); batched dot_general.
        scores = jnp.einsum("bqh,bkh->bqk",
                            pq.astype(mxu_dtype), pk.astype(mxu_dtype),
                            preferred_element_type=jnp.float32)
        if has_mask:
            scores = jnp.where(mask_ref[...] == 0, -1e9, scores)

        # softmax(dim=-1) in f32.
        m = jnp.max(scores, axis=-1, keepdims=True)
        e = jnp.exp(scores - m)
        denom = jnp.sum(e, axis=-1, keepdims=True)
        if return_alphas:
            alphas = e / denom                                   # exact softmax out
        else:
            alphas = e * pl.reciprocal(denom, approx=True)       # EUP slot

        ctx = jnp.einsum("bqk,bkd->bqd", alphas.astype(mxu_dtype), v3,
                         preferred_element_type=jnp.float32)
        ctx_ref[...] = ctx.astype(ctx_ref.dtype)
        if return_alphas:
            alphas_ref[...] = alphas.astype(alphas_ref.dtype)

    return kernel


def _make_flash_kernel(Bt, Lq, lk_tile, H, proj_values, has_mask, mxu_dtype):
    """Lk-tiled online-softmax (flash-style) path: context only, bounded working set."""

    def kernel(*refs):
        i = 0
        q_ref = refs[i]; i += 1
        k_ref = refs[i]; i += 1
        mask_ref = None
        if has_mask:
            mask_ref = refs[i]; i += 1
        wq_ref, bq_ref, wkv_ref, bkv_ref = refs[i:i + 4]; i += 4
        ctx_ref = refs[i]; i += 1
        pq_sc, m_sc, l_sc, acc_sc = refs[i:i + 4]

        kstep = pl.program_id(1)
        Din = q_ref.shape[-1]

        # Project the query tile once per batch tile and keep it resident in VMEM.
        @pl.when(kstep == 0)
        def _():
            q2 = q_ref[...].reshape(Bt * Lq, Din).astype(mxu_dtype)
            pq = (jnp.dot(q2, wq_ref[...], preferred_element_type=jnp.float32)
                  + bq_ref[...])
            pq_sc[...] = pq.reshape(Bt, Lq, H).astype(pq_sc.dtype)

        # Project this key tile (K and V fused in one matmul when proj_values).
        k2 = k_ref[...].reshape(Bt * lk_tile, Din).astype(mxu_dtype)
        pkv = jnp.dot(k2, wkv_ref[...], preferred_element_type=jnp.float32) + bkv_ref[...]
        if proj_values:
            pk = pkv[:, :H].reshape(Bt, lk_tile, H)
            v3 = pkv[:, H:].reshape(Bt, lk_tile, H).astype(mxu_dtype)
        else:
            pk = pkv.reshape(Bt, lk_tile, H)
            v3 = k_ref[...].astype(mxu_dtype)

        s = jnp.einsum("bqh,bkh->bqk",
                       pq_sc[...].astype(mxu_dtype), pk.astype(mxu_dtype),
                       preferred_element_type=jnp.float32)
        if has_mask:
            s = jnp.where(mask_ref[...] == 0, -1e9, s)
        m_tile = jnp.max(s, axis=-1, keepdims=True)

        # First Lk tile: initialize the online-softmax state (no -inf constants needed).
        @pl.when(kstep == 0)
        def _():
            p = jnp.exp(s - m_tile)
            m_sc[...] = m_tile
            l_sc[...] = jnp.sum(p, axis=-1, keepdims=True)
            acc_sc[...] = jnp.einsum("bqk,bkd->bqd", p.astype(mxu_dtype), v3,
                                     preferred_element_type=jnp.float32)

        # Subsequent Lk tiles: rescale-and-accumulate.
        @pl.when(kstep > 0)
        def _():
            m_new = jnp.maximum(m_sc[...], m_tile)
            a = jnp.exp(m_sc[...] - m_new)
            p = jnp.exp(s - m_new)
            l_sc[...] = a * l_sc[...] + jnp.sum(p, axis=-1, keepdims=True)
            acc_sc[...] = a * acc_sc[...] + jnp.einsum(
                "bqk,bkd->bqd", p.astype(mxu_dtype), v3,
                preferred_element_type=jnp.float32)
            m_sc[...] = m_new

        @pl.when(kstep == pl.num_programs(1) - 1)
        def _():
            ctx_ref[...] = (acc_sc[...] * pl.reciprocal(l_sc[...], approx=True)
                            ).astype(ctx_ref.dtype)

    return kernel


# ----------------------------------------------------------------------------------
# Wrapper
# ----------------------------------------------------------------------------------
def attention_forward(query, keys, params, mask=None, proj_values=False,
                      return_alphas=True, mxu_dtype=jnp.bfloat16, lk_tile=128):
    """Pallas implementation of Attention.forward (after init_key(keys)).

    Returns (context, alphas); alphas is None when return_alphas=False.
    """
    B, Lq, Din = query.shape
    B2, Lk, Din_k = keys.shape
    assert B == B2 and Din == Din_k
    H = params["wq"].shape[0]               # torch nn.Linear weight shape: (H, Din)
    d_k = H
    out_dim = H if proj_values else Din
    out_dtype = query.dtype

    # --- weight prep (plain JAX glue; a real deployment would pre-fold these once) ----
    scale = 1.0 / math.sqrt(d_k)
    wq = (params["wq"].T * scale).astype(mxu_dtype)               # scale folded into Q
    bq = (params["bq"] * scale).reshape(1, H).astype(jnp.float32)
    if proj_values:
        wkv = jnp.concatenate([params["wk"].T, params["wv"].T], axis=1).astype(mxu_dtype)
        bkv = jnp.concatenate([params["bk"], params["bv"]]).reshape(1, 2 * H).astype(jnp.float32)
        n_kv = 2 * H
    else:                                                          # wv/bv not shipped at all
        wkv = params["wk"].T.astype(mxu_dtype)
        bkv = params["bk"].reshape(1, H).astype(jnp.float32)
        n_kv = H

    if mask is not None and mask.dtype.name not in ("int8", "bool"):
        # Prefer int8/bool masks from the caller to avoid this per-call cast.
        mask = mask.astype(jnp.int8)

    # --- path selection -----------------------------------------------------------
    use_flash = ((not return_alphas) and lk_tile is not None and lk_tile % 128 == 0
                 and Lk % lk_tile == 0 and Lk // lk_tile >= 2)
    lk_eff = lk_tile if use_flash else Lk

    # --- tile sizing (generation aware) --------------------------------------------
    num_cores = _num_tensorcores_per_chip()
    vmem_limit = _vmem_limit_bytes()
    mxu_isz = np.dtype(mxu_dtype).itemsize
    per_b = 0
    per_b += 2 * Lq * Din * query.dtype.itemsize                 # q tile (double buffered)
    per_b += 2 * lk_eff * Din * keys.dtype.itemsize              # k tile
    if mask is not None:
        per_b += 2 * Lq * lk_eff * mask.dtype.itemsize
    per_b += 2 * Lq * out_dim * np.dtype(out_dtype).itemsize     # ctx tile
    if return_alphas and not use_flash:
        per_b += 2 * Lq * Lk * 4
    per_b += 2 * Lq * lk_eff * 4                                 # scores / exp (f32)
    per_b += (Lq + 2 * lk_eff) * H * 4                           # pq / pkv (f32)
    if use_flash:
        per_b += Lq * (H * mxu_isz + out_dim * 4 + 8)            # pq/m/l/acc scratch
    weights_bytes = Din * (H + n_kv) * mxu_isz + (H + n_kv) * 8
    budget = vmem_limit // 2 - weights_bytes
    Bt = _choose_bt(B, Lq, per_b, budget, num_cores)

    # --- specs ----------------------------------------------------------------------
    data_inputs = [query, keys]
    if use_flash:
        grid = (B // Bt, Lk // lk_tile)
        data_specs = [
            pl.BlockSpec((Bt, Lq, Din), lambda b, k: (b, 0, 0)),
            pl.BlockSpec((Bt, lk_tile, Din), lambda b, k: (b, k, 0)),
        ]
        if mask is not None:
            data_inputs.append(mask)
            data_specs.append(pl.BlockSpec((Bt, Lq, lk_tile), lambda b, k: (b, 0, k)))
        w_map = lambda b, k: (0, 0)
        sem = ("parallel", "arbitrary")          # reduction (Lk) axis last
    else:
        grid = (B // Bt,)
        data_specs = [
            pl.BlockSpec((Bt, Lq, Din), lambda b: (b, 0, 0)),
            pl.BlockSpec((Bt, Lk, Din), lambda b: (b, 0, 0)),
        ]
        if mask is not None:
            data_inputs.append(mask)
            data_specs.append(pl.BlockSpec((Bt, Lq, Lk), lambda b: (b, 0, 0)))
        w_map = lambda b: (0, 0)
        sem = ("parallel",)

    # Constant-index weight blocks: Pallas does not re-DMA an unchanged block index.
    weight_inputs = [wq, bq, wkv, bkv]
    weight_specs = [
        pl.BlockSpec((Din, H), w_map),
        pl.BlockSpec((1, H), w_map),
        pl.BlockSpec((Din, n_kv), w_map),
        pl.BlockSpec((1, n_kv), w_map),
    ]

    ctx_shape = jax.ShapeDtypeStruct((B, Lq, out_dim), out_dtype)
    scratch = ()
    if use_flash:
        out_specs_arg = pl.BlockSpec((Bt, Lq, out_dim), lambda b, k: (b, 0, 0))
        out_shape_arg = ctx_shape
        scratch = (
            pltpu.VMEM((Bt, Lq, H), mxu_dtype),          # projected query (resident)
            pltpu.VMEM((Bt, Lq, 1), jnp.float32),        # running max
            pltpu.VMEM((Bt, Lq, 1), jnp.float32),        # running denom
            pltpu.VMEM((Bt, Lq, out_dim), jnp.float32),  # context accumulator
        )
        kernel = _make_flash_kernel(Bt, Lq, lk_tile, H, proj_values,
                                    mask is not None, mxu_dtype)
    else:
        ctx_spec = pl.BlockSpec((Bt, Lq, out_dim), lambda b: (b, 0, 0))
        if return_alphas:
            out_specs_arg = (ctx_spec, pl.BlockSpec((Bt, Lq, Lk), lambda b: (b, 0, 0)))
            out_shape_arg = (ctx_shape, jax.ShapeDtypeStruct((B, Lq, Lk), jnp.float32))
        else:
            out_specs_arg = ctx_spec
            out_shape_arg = ctx_shape
        kernel = _make_full_kernel(Bt, Lq, Lk, H, proj_values, mask is not None,
                                   return_alphas, mxu_dtype)

    result = pl.pallas_call(
        kernel,
        grid=grid,
        in_specs=data_specs + weight_specs,
        out_specs=out_specs_arg,
        out_shape=out_shape_arg,
        scratch_shapes=scratch,
        compiler_params=pltpu.CompilerParams(
            dimension_semantics=sem,
            vmem_limit_bytes=vmem_limit,
        ),
    )(*(data_inputs + weight_inputs))

    if (not use_flash) and return_alphas:
        return result[0], result[1]
    return result, None


# ----------------------------------------------------------------------------------
# Reference + test harness
# ----------------------------------------------------------------------------------
def _reference(query, keys, params, mask=None, proj_values=False):
    """Pure-JAX reference mirroring the PyTorch module."""
    H = params["wq"].shape[0]
    pq = query @ params["wq"].T + params["bq"]
    pk = keys @ params["wk"].T + params["bk"]
    v = (keys @ params["wv"].T + params["bv"]) if proj_values else keys
    scores = jnp.einsum("bqh,bkh->bqk", pq, pk) / math.sqrt(H)
    if mask is not None:
        scores = jnp.where(mask == 0, -1e9, scores)
    alphas = jax.nn.softmax(scores, axis=-1)
    ctx = jnp.einsum("bqk,bkd->bqd", alphas, v)
    return ctx, alphas


def _init_params(key, hidden_dim, input_dim):
    # Deterministic init matching nn.Linear shapes (uniform in +-1/sqrt(fan_in)).
    ks = jax.random.split(key, 6)
    bound = 1.0 / math.sqrt(input_dim)
    u = functools.partial(jax.random.uniform, minval=-bound, maxval=bound,
                          dtype=jnp.float32)
    return {
        "wq": u(ks[0], (hidden_dim, input_dim)),
        "bq": u(ks[1], (hidden_dim,)),
        "wk": u(ks[2], (hidden_dim, input_dim)),
        "bk": u(ks[3], (hidden_dim,)),
        "wv": u(ks[4], (hidden_dim, input_dim)),
        "bv": u(ks[5], (hidden_dim,)),
    }


if __name__ == "__main__":
    B, Lq, Lk, D_IN, HIDDEN = 8, 8, 8, 32, 32

    root = jax.random.PRNGKey(0)
    k_q, k_k, k_m, k_p, k_q2, k_k2, k_m2 = jax.random.split(root, 7)

    query = jax.random.normal(k_q, (B, Lq, D_IN), dtype=jnp.float32)
    keys = jax.random.normal(k_k, (B, Lk, D_IN), dtype=jnp.float32)
    params = _init_params(k_p, HIDDEN, D_IN)

    # Case 1: default module config (proj_values=False, mask=None), f32 MXU operands.
    ctx1, al1 = attention_forward(query, keys, params, mxu_dtype=jnp.float32)
    jax.block_until_ready((ctx1, al1))
    rctx1, ral1 = _reference(query, keys, params)
    assert jnp.allclose(ctx1, rctx1, atol=5e-3, rtol=5e-3), "case1 ctx mismatch"
    assert jnp.allclose(al1, ral1, atol=5e-3, rtol=5e-3), "case1 alphas mismatch"

    # Case 2: proj_values=True with an int8 mask (masked_fill path), f32 MXU operands.
    mask = (jax.random.uniform(k_m, (B, Lq, Lk)) > 0.3).astype(jnp.int8)
    ctx2, al2 = attention_forward(query, keys, params, mask=mask, proj_values=True,
                                  mxu_dtype=jnp.float32)
    jax.block_until_ready((ctx2, al2))
    rctx2, ral2 = _reference(query, keys, params, mask=mask, proj_values=True)
    assert jnp.allclose(ctx2, rctx2, atol=5e-3, rtol=5e-3), "case2 ctx mismatch"
    assert jnp.allclose(al2, ral2, atol=5e-3, rtol=5e-3), "case2 alphas mismatch"

    # Case 3: default bf16 MXU fast path, context-only output (no alphas writeback).
    ctx3, al3 = attention_forward(query, keys, params, mask=mask, proj_values=True,
                                  return_alphas=False)
    jax.block_until_ready(ctx3)
    assert al3 is None
    assert jnp.allclose(ctx3, rctx2, atol=1e-1, rtol=1e-1), "case3 ctx mismatch"

    # Case 4: long-Lk flash path (Lk grid axis + online softmax), f32 MXU operands.
    Bf, Lqf, Lkf = 2, 8, 256
    qf = jax.random.normal(k_q2, (Bf, Lqf, D_IN), dtype=jnp.float32)
    kf = jax.random.normal(k_k2, (Bf, Lkf, D_IN), dtype=jnp.float32)
    maskf = (jax.random.uniform(k_m2, (Bf, Lqf, Lkf)) > 0.3).astype(jnp.int8)
    ctx4, al4 = attention_forward(qf, kf, params, mask=maskf, proj_values=True,
                                  return_alphas=False, mxu_dtype=jnp.float32)
    jax.block_until_ready(ctx4)
    assert al4 is None
    rctx4, _ = _reference(qf, kf, params, mask=maskf, proj_values=True)
    assert jnp.allclose(ctx4, rctx4, atol=1e-2, rtol=1e-2), "case4 ctx mismatch"

    print("KERNEL_OK")
</pallas_src>

<mosaic_0001>
module attributes {stable_mosaic.version = 11 : i64} {
  func.func @kernel(%arg0: i32, %arg1: memref<8x8x32xf32, #tpu.memory_space<vmem>>, %arg2: memref<8x8x32xf32, #tpu.memory_space<vmem>>, %arg3: memref<32x32xf32, #tpu.memory_space<vmem>>, %arg4: memref<1x32xf32, #tpu.memory_space<vmem>>, %arg5: memref<32x32xf32, #tpu.memory_space<vmem>>, %arg6: memref<1x32xf32, #tpu.memory_space<vmem>>, %arg7: memref<8x8x32xf32, #tpu.memory_space<vmem>>, %arg8: memref<8x8x8xf32, #tpu.memory_space<vmem>>) attributes {dimension_semantics = [#tpu.dimension_semantics<parallel>], iteration_bounds = array<i64: 1>, scalar_prefetch = 0 : i64, scratch_operands = 0 : i64, tpu.core_type = #tpu.core_type<tc>, window_params = [{transform_indices = @transform_0, window_bounds = array<i64: 8, 8, 32>}, {transform_indices = @transform_1, window_bounds = array<i64: 8, 8, 32>}, {pipeline_mode = #tpu.pipeline_mode<synchronous>, transform_indices = @transform_2, window_bounds = array<i64: 32, 32>}, {pipeline_mode = #tpu.pipeline_mode<synchronous>, transform_indices = @transform_3, window_bounds = array<i64: 1, 32>}, {pipeline_mode = #tpu.pipeline_mode<synchronous>, transform_indices = @transform_4, window_bounds = array<i64: 32, 32>}, {pipeline_mode = #tpu.pipeline_mode<synchronous>, transform_indices = @transform_5, window_bounds = array<i64: 1, 32>}, {transform_indices = @transform_6, window_bounds = array<i64: 8, 8, 32>}, {transform_indices = @transform_7, window_bounds = array<i64: 8, 8, 8>}]} {
    %c0 = arith.constant 0 : index
    %c0_0 = arith.constant 0 : index
    %c0_1 = arith.constant 0 : index
    %0 = vector.load %arg1[%c0, %c0_0, %c0_1] : memref<8x8x32xf32, #tpu.memory_space<vmem>>, vector<8x8x32xf32>
    %1 = vector.shape_cast %0 : vector<8x8x32xf32> to vector<64x32xf32>
    %c0_2 = arith.constant 0 : index
    %c0_3 = arith.constant 0 : index
    %c0_4 = arith.constant 0 : index
    %2 = vector.load %arg2[%c0_2, %c0_3, %c0_4] : memref<8x8x32xf32, #tpu.memory_space<vmem>>, vector<8x8x32xf32>
    %3 = vector.shape_cast %2 : vector<8x8x32xf32> to vector<64x32xf32>
    %c0_5 = arith.constant 0 : index
    %c0_6 = arith.constant 0 : index
    %4 = vector.load %arg3[%c0_5, %c0_6] : memref<32x32xf32, #tpu.memory_space<vmem>>, vector<32x32xf32>
    %cst = arith.constant dense<0.000000e+00> : vector<64x32xf32>
    %5 = tpu.matmul %1, %4, %cst {dimension_numbers = #tpu.dot_dimension_numbers<[1], [0], [0], [1], [0, 0, 1, 1], [], []>} : vector<64x32xf32>, vector<32x32xf32>, vector<64x32xf32> -> vector<64x32xf32>
    %c0_7 = arith.constant 0 : index
    %c0_8 = arith.constant 0 : index
    %6 = vector.load %arg4[%c0_7, %c0_8] : memref<1x32xf32, #tpu.memory_space<vmem>>, vector<1x32xf32>
    %7 = vector.broadcast %6 : vector<1x32xf32> to vector<64x32xf32>
    %8 = arith.addf %5, %7 : vector<64x32xf32>
    %9 = vector.shape_cast %8 : vector<64x32xf32> to vector<8x8x32xf32>
    %c0_9 = arith.constant 0 : index
    %c0_10 = arith.constant 0 : index
    %10 = vector.load %arg5[%c0_9, %c0_10] : memref<32x32xf32, #tpu.memory_space<vmem>>, vector<32x32xf32>
    %cst_11 = arith.constant dense<0.000000e+00> : vector<64x32xf32>
    %11 = tpu.matmul %3, %10, %cst_11 {dimension_numbers = #tpu.dot_dimension_numbers<[1], [0], [0], [1], [0, 0, 1, 1], [], []>} : vector<64x32xf32>, vector<32x32xf32>, vector<64x32xf32> -> vector<64x32xf32>
    %c0_12 = arith.constant 0 : index
    %c0_13 = arith.constant 0 : index
    %12 = vector.load %arg6[%c0_12, %c0_13] : memref<1x32xf32, #tpu.memory_space<vmem>>, vector<1x32xf32>
    %13 = vector.broadcast %12 : vector<1x32xf32> to vector<64x32xf32>
    %14 = arith.addf %11, %13 : vector<64x32xf32>
    %15 = vector.shape_cast %14 : vector<64x32xf32> to vector<8x8x32xf32>
    %c0_14 = arith.constant 0 : index
    %c0_15 = arith.constant 0 : index
    %c0_16 = arith.constant 0 : index
    %16 = vector.load %arg2[%c0_14, %c0_15, %c0_16] : memref<8x8x32xf32, #tpu.memory_space<vmem>>, vector<8x8x32xf32>
    "tpu.trace_start"() <{level = 10 : i32, message = "bqh,bkh->bqk"}> : () -> ()
    %cst_17 = arith.constant dense<0.000000e+00> : vector<8x8x8xf32>
    %17 = tpu.matmul %9, %15, %cst_17 {dimension_numbers = #tpu.dot_dimension_numbers<[2], [2], [1], [1], [0, 0, 0, 1, 1, 1], [0], [0]>} : vector<8x8x32xf32>, vector<8x8x32xf32>, vector<8x8x8xf32> -> vector<8x8x8xf32>
    "tpu.trace_stop"() : () -> ()
    %cst_18 = arith.constant dense<0xFF800000> : vector<8x8xf32>
    %18 = vector.multi_reduction <maximumf>, %17, %cst_18 [2] : vector<8x8x8xf32> to vector<8x8xf32>
    %19 = vector.shape_cast %18 : vector<8x8xf32> to vector<8x8x1xf32>
    %20 = vector.broadcast %19 : vector<8x8x1xf32> to vector<8x8x8xf32>
    %21 = arith.subf %17, %20 : vector<8x8x8xf32>
    %22 = math.exp %21 : vector<8x8x8xf32>
    %cst_19 = arith.constant dense<0.000000e+00> : vector<8x8xf32>
    %23 = vector.multi_reduction <add>, %22, %cst_19 [2] : vector<8x8x8xf32> to vector<8x8xf32>
    %24 = vector.shape_cast %23 : vector<8x8xf32> to vector<8x8x1xf32>
    %25 = vector.broadcast %24 : vector<8x8x1xf32> to vector<8x8x8xf32>
    %26 = arith.divf %22, %25 : vector<8x8x8xf32>
    "tpu.trace_start"() <{level = 10 : i32, message = "bqk,bkd->bqd"}> : () -> ()
    %cst_20 = arith.constant dense<0.000000e+00> : vector<8x8x32xf32>
    %27 = tpu.matmul %26, %16, %cst_20 {dimension_numbers = #tpu.dot_dimension_numbers<[2], [1], [1], [2], [0, 0, 0, 1, 1, 2], [0], [0]>} : vector<8x8x8xf32>, vector<8x8x32xf32>, vector<8x8x32xf32> -> vector<8x8x32xf32>
    "tpu.trace_stop"() : () -> ()
    %c0_21 = arith.constant 0 : index
    %c0_22 = arith.constant 0 : index
    %c0_23 = arith.constant 0 : index
    %28 = vector.load %arg7[%c0_21, %c0_22, %c0_23] : memref<8x8x32xf32, #tpu.memory_space<vmem>>, vector<8x8x32xf32>
    tpu.vector_store %arg7[%c0_21, %c0_22, %c0_23], %27 {strides = array<i32>} : memref<8x8x32xf32, #tpu.memory_space<vmem>>, vector<8x8x32xf32>,
    %c0_24 = arith.constant 0 : index
    %c0_25 = arith.constant 0 : index
    %c0_26 = arith.constant 0 : index
    %29 = vector.load %arg8[%c0_24, %c0_25, %c0_26] : memref<8x8x8xf32, #tpu.memory_space<vmem>>, vector<8x8x8xf32>
    tpu.vector_store %arg8[%c0_24, %c0_25, %c0_26], %26 {strides = array<i32>} : memref<8x8x8xf32, #tpu.memory_space<vmem>>, vector<8x8x8xf32>,
    return
  }
  func.func @transform_0(%arg0: i32) -> (i32, i32, i32) {
    %c0_i32 = arith.constant 0 : i32
    %c0_i32_0 = arith.constant 0 : i32
    %c0_i32_1 = arith.constant 0 : i32
    return %arg0, %c0_i32, %c0_i32_0 : i32, i32, i32
  }
  func.func @transform_1(%arg0: i32) -> (i32, i32, i32) {
    %c0_i32 = arith.constant 0 : i32
    %c0_i32_0 = arith.constant 0 : i32
    %c0_i32_1 = arith.constant 0 : i32
    return %arg0, %c0_i32, %c0_i32_0 : i32, i32, i32
  }
  func.func @transform_2(%arg0: i32) -> (i32, i32) {
    %c0_i32 = arith.constant 0 : i32
    %c0_i32_0 = arith.constant 0 : i32
    %c0_i32_1 = arith.constant 0 : i32
    return %c0_i32, %c0_i32_0 : i32, i32
  }
  func.func @transform_3(%arg0: i32) -> (i32, i32) {
    %c0_i32 = arith.constant 0 : i32
    %c0_i32_0 = arith.constant 0 : i32
    %c0_i32_1 = arith.constant 0 : i32
    return %c0_i32, %c0_i32_0 : i32, i32
  }
  func.func @transform_4(%arg0: i32) -> (i32, i32) {
    %c0_i32 = arith.constant 0 : i32
    %c0_i32_0 = arith.constant 0 : i32
    %c0_i32_1 = arith.constant 0 : i32
    return %c0_i32, %c0_i32_0 : i32, i32
  }
  func.func @transform_5(%arg0: i32) -> (i32, i32) {
    %c0_i32 = arith.constant 0 : i32
    %c0_i32_0 = arith.constant 0 : i32
    %c0_i32_1 = arith.constant 0 : i32
    return %c0_i32, %c0_i32_0 : i32, i32
  }
  func.func @transform_6(%arg0: i32) -> (i32, i32, i32) {
    %c0_i32 = arith.constant 0 : i32
    %c0_i32_0 = arith.constant 0 : i32
    %c0_i32_1 = arith.constant 0 : i32
    return %arg0, %c0_i32, %c0_i32_0 : i32, i32, i32
  }
  func.func @transform_7(%arg0: i32) -> (i32, i32, i32) {
    %c0_i32 = arith.constant 0 : i32
    %c0_i32_0 = arith.constant 0 : i32
    %c0_i32_1 = arith.constant 0 : i32
    return %arg0, %c0_i32, %c0_i32_0 : i32, i32, i32
  }
}

</mosaic_0001>

<bundles_post_ra>
// kernel: tpu_custom_call.1
= control target key start
LH: loop header
LB: loop body
LE: loop exit
PB: predicated region body
PF: predicated region fallthrough
CT: control target
= control target key end

     0   :  { %13 = vsyncpa [#allocation3], 0  ;;  %s2449_s0 = inlined_call_operand.hbm [shape: f32[8,8,32], index: 0, kind: input, shape index: {}]   ;;  %s2450_s1 = inlined_call_operand.hbm [shape: f32[8,8,32], index: 1, kind: input, shape index: {}]   ;;  %s2451_s2 = inlined_call_operand.hbm [shape: f32[32,32], index: 2, kind: input, shape index: {}]   ;;  %s2452_s3 = inlined_call_operand.vmem [shape: f32[1,32], index: 3, kind: input, shape index: {}]   ;;  %s2453_s4 = inlined_call_operand.hbm [shape: f32[32,32], index: 4, kind: input, shape index: {}]   ;;  %s2454_s5 = inlined_call_operand.vmem [shape: f32[1,32], index: 5, kind: input, shape index: {}]   ;;  %s2455_s6 = inlined_call_operand.hbm [shape: f32[8,8,32], index: 6, kind: output, shape index: {0}]   ;;  %s2456_s7 = inlined_call_operand.hbm [shape: f32[8,8,8], index: 7, kind: output, shape index: {1}]  }
   0x1   :  { %14 = vsyncpa [#allocation6], 0 }
   0x2   :  { %15 = vsyncpa [#allocation9], 0 }
   0x3   :  { %16 = vsyncpa [#allocation4], 0 }
   0x4   :  { %17 = vsyncpa [#allocation12], 0  ;;  %s2129_s24 = smov [#allocation5]   ;;  %s2130_s26 = smov [#allocation2]  }
   0x5   :  { %s35_s25 = sshll.u32 %s2129_s24, 4  ;;  %s23_s27 = sshll.u32 %s2130_s26, 4  ;;  %s36_s25 = int_to_ptr.vmem [resolvable:$true] %s35_s25  ;;  %s2179_s27 = int_to_ptr.vmem [resolvable:$true] %s23_s27 }
   0x6   :  { %s1987_s30 = scalar_lea.hbm %s2450_s1, 1024 }
   0x7   :  { %p1988_p0 = scmp.ne.s32.totalorder %s2450_s1, %s1987_s30  ;;  %p1991_p1 = scmp.lt.u32.totalorder %s1987_s30, %s2450_s1 }
   0x9   :  { %p1993_p2 = pnand %p1991_p1, %p1988_p0 }
   0xb   :  { %1996 = shalt.err (!%p1993_p2)
}
   0xc   :  { %s1997_s12 = scalar_lea.vmem %s36_s25, 1024  ;;  %p2002_p4 = scmp.lt.s32.totalorder %s36_s25, %s36_s25 }
   0xd   :  { %p1998_p3 = scmp.ne.s32.totalorder %s36_s25, %s1997_s12  ;;  %p2003_p5 = scmp.lt.s32.totalorder %s1997_s12, %s1997_s12 }
   0xf   :  { %p2004_p6 = por %p2003_p5, %p2002_p4 }
  0x11   :  { %p2005_p7 = pnand %p2004_p6, %p1998_p3 }
  0x13   :  { %2008 = shalt.err (!%p2005_p7)
}
  0x14   :  { %s2131_s13 = smov 128   ;;  %s2132_s14 = smov 8  }
  0x15   :  { %41 = dma.hbm_to_vmem [thread:$0]  %s2450_s1, 1024, %s36_s25, [#allocation6], %s2131_s13, %s2131_s13, %s2132_s14  }
  0x16   :  { %s2009_s19 = scalar_lea.hbm %s2449_s0, 1024 }
  0x17   :  { %p2010_p8 = scmp.ne.s32.totalorder %s2449_s0, %s2009_s19  ;;  %p2013_p9 = scmp.lt.u32.totalorder %s2009_s19, %s2449_s0 }
  0x19   :  { %p2015_p10 = pnand %p2013_p9, %p2010_p8 }
  0x1b   :  { %2018 = shalt.err (!%p2015_p10)
}
  0x1c   :  { %s2019_s24 = scalar_lea.vmem %s2179_s27, 1024  ;;  %p2024_p12 = scmp.lt.s32.totalorder %s2179_s27, %s2179_s27 }
  0x1d   :  { %p2020_p11 = scmp.ne.s32.totalorder %s2179_s27, %s2019_s24  ;;  %p2025_p13 = scmp.lt.s32.totalorder %s2019_s24, %s2019_s24 }
  0x1f   :  { %p2026_p0 = por %p2025_p13, %p2024_p12 }
  0x21   :  { %p2027_p1 = pnand %p2026_p0, %p2020_p11 }
  0x23   :  { %2030 = shalt.err (!%p2027_p1)
}
  0x24   :  { %29 = dma.hbm_to_vmem [thread:$0]  %s2449_s0, 1024, %s2179_s27, [#allocation3], %s2131_s13, %s2131_s13, %s2132_s14  }
  0x25   :  { %s2133_s26 = smov [#allocation7]   ;;  %s2134_s29 = smov [#allocation8]  }
  0x26   :  { %s47_s28 = sshll.u32 %s2133_s26, 4  ;;  %s61_s30 = sshll.u32 %s2134_s29, 4  ;;  %s48_s28 = int_to_ptr.vmem [resolvable:$true] %s47_s28  ;;  %s2216_s30 = int_to_ptr.vmem [resolvable:$true] %s61_s30 }
  0x27   :  { %s2031_s10 = scalar_lea.hbm %s2451_s2, 512 }
  0x28   :  { %p2032_p2 = scmp.ne.s32.totalorder %s2451_s2, %s2031_s10  ;;  %p2035_p3 = scmp.lt.u32.totalorder %s2031_s10, %s2451_s2 }
  0x2a   :  { %p2037_p4 = pnand %p2035_p3, %p2032_p2 }
  0x2c   :  { %2040 = shalt.err (!%p2037_p4)
}
  0x2d   :  { %s2041_s0 = scalar_lea.vmem %s48_s28, 512  ;;  %p2046_p6 = scmp.lt.s32.totalorder %s48_s28, %s48_s28 }
  0x2e   :  { %p2042_p5 = scmp.ne.s32.totalorder %s48_s28, %s2041_s0  ;;  %p2047_p7 = scmp.lt.s32.totalorder %s2041_s0, %s2041_s0 }
  0x30   :  { %p2048_p8 = por %p2047_p7, %p2046_p6 }
  0x32   :  { %p2049_p9 = pnand %p2048_p8, %p2042_p5 }
  0x34   :  { %2052 = shalt.err (!%p2049_p9)
}
  0x35   :  { %53 = dma.hbm_to_vmem [thread:$0]  %s2451_s2, 512, %s48_s28, [#allocation6], %s2131_s13, %s2131_s13, %s2132_s14  }
  0x36   :  { %s2053_s20 = scalar_lea.hbm %s2453_s4, 512 }
  0x37   :  { %p2054_p10 = scmp.ne.s32.totalorder %s2453_s4, %s2053_s20  ;;  %p2057_p11 = scmp.lt.u32.totalorder %s2053_s20, %s2453_s4 }
  0x39   :  { %p2059_p12 = pnand %p2057_p11, %p2054_p10 }
  0x3b   :  { %2062 = shalt.err (!%p2059_p12)
}
  0x3c   :  { %s2063_s1 = scalar_lea.vmem %s2216_s30, 512  ;;  %p2068_p0 = scmp.lt.s32.totalorder %s2216_s30, %s2216_s30 }
  0x3d   :  { %p2064_p13 = scmp.ne.s32.totalorder %s2216_s30, %s2063_s1  ;;  %p2069_p1 = scmp.lt.s32.totalorder %s2063_s1, %s2063_s1 }
  0x3f   :  { %p2070_p2 = por %p2069_p1, %p2068_p0 }
  0x41   :  { %p2071_p3 = pnand %p2070_p2, %p2064_p13 }
  0x43   :  { %2074 = shalt.err (!%p2071_p3)
}
  0x44   :  { %67 = dma.hbm_to_vmem [thread:$0]  %s2453_s4, 512, %s2216_s30, [#allocation9], %s2131_s13, %s2131_s13, %s2132_s14  }
  0x45   :  { %2119 = dma.done.wait [#allocation3], 1024  }
  0x46   :  { %2120 = vsyncadd [#allocation3], 4294966272 }
  0x47   :  { %2121 = dma.done.wait [#allocation6], 1536  }
  0x48   :  { %2122 = vsyncadd [#allocation6], 4294965760 }
  0x49   :  { %2123 = dma.done.wait [#allocation9], 512  }
  0x4a   :  { %2124 = vsyncadd [#allocation9], 4294966784  ;;  %v239_v0 = vld [vmem:[#allocation8] sm:$0xff]  ;;  %v240_v1 = vld [vmem:[#allocation8 + $0x8] sm:$0xff]  ;;  %vm109_vm0 = vcmask 261120   ;;  %v2135_v28 = vmov 0.0  }
  0x4b   :  { %v98_v2 = vld [vmem:[#allocation7] sm:$0xff]  ;;  %v1937_v3 = vpack.c.bf16 %v240_v1, %v239_v0  ;;  %v99_v4 = vld [vmem:[#allocation7 + $0x8] sm:$0xff]  ;;  %v241_v5 = vld [vmem:[#allocation8 + $0x10] sm:$0xff]  ;;  %vm2136_vm1 = vmmov 0   ;;  %vm987_vm2 = vcmask 64512  }
  0x4c   :  { %v242_v6 = vld [vmem:[#allocation8 + $0x18] sm:$0xff]  ;;  %v1929_v7 = vpack.c.bf16 %v99_v4, %v98_v2  ;;  %v100_v9 = vld [vmem:[#allocation7 + $0x10] sm:$0xff]  ;;  %v2253_v11 = vld [vmem:[#allocation5] sm:$0xff] }
  0x4d   :  { %v1941_v8 = vpack.c.bf16 %v242_v6, %v241_v5  ;;  %v101_v10 = vld [vmem:[#allocation7 + $0x18] sm:$0xff]  ;;  %1938 = vmatprep.subr.bf16.mxu1 %v1937_v3  ;;  %1837 = vmatprep.mubr.msk.f32.mxu1 %vm109_vm0, %v2253_v11  ;;  %v82_v13 = vld [vmem:[#allocation2] sm:$0xff]  ;;  %v2258_v14 = vld [vmem:[#allocation5 + $0x8] sm:$0xff] }
  0x4e   :  { %v1933_v12 = vpack.c.bf16 %v101_v10, %v100_v9  ;;  %1940 = vmatpush3.bf16.msra.mxu1 %v1937_v3  ;;  %1930 = vmatprep.subr.bf16.mxu0 %v1929_v7  ;;  %v83_v15 = vld [vmem:[#allocation2 + $0x8] sm:$0xff]  ;;  %v2260_v16 = vld [vmem:[#allocation5 + $0x10] sm:$0xff]  ;;  %v2267_v18 = vld [vmem:[#allocation5 + $0x18] sm:$0xff] }
  0x4f   :  { %1932 = vmatpush3.bf16.msra.mxu0 %v1929_v7  ;;  %1942 = vmatprep.subr.bf16.mxu1 %v1941_v8  ;;  %v84_v17 = vld [vmem:[#allocation2 + $0x10] sm:$0xff]  ;;  %v85_v19 = vld [vmem:[#allocation2 + $0x18] sm:$0xff]  ;;  %v2270_v20 = vld [vmem:[#allocation5 + $0x20] sm:$0xff] }
  0x50   :  { %1934 = vmatprep.subr.bf16.mxu0 %v1933_v12  ;;  %1817 = vmatprep.mubr.msk.f32.mxu0 %vm109_vm0, %v82_v13  ;;  %v86_v21 = vld [vmem:[#allocation2 + $0x20] sm:$0xff]  ;;  %v2277_v22 = vld [vmem:[#allocation5 + $0x28] sm:$0xff]  ;;  %v2280_v24 = vld [vmem:[#allocation5 + $0x30] sm:$0xff] }
  0x51   :  { %v87_v23 = vld [vmem:[#allocation2 + $0x28] sm:$0xff]  ;;  %v88_v25 = vld [vmem:[#allocation2 + $0x30] sm:$0xff]  ;;  %v2287_v26 = vld [vmem:[#allocation5 + $0x38] sm:$0xff] }
  0x52   :  { %1944 = vmatpush3.bf16.msra.mxu1 %v1941_v8  ;;  %v89_v27 = vld [vmem:[#allocation2 + $0x38] sm:$0xff]  ;;  %v1720_v29 = vld [vmem:[%s2454_s5] ss:$0 sm:$0xff] }
  0x53   :  { %1936 = vmatpush3.bf16.msra.mxu0 %v1933_v12  ;;  %1854 = vmatprep.subr.mxu1 %v2135_v28  ;;  %v1711_v30 = vld [vmem:[%s2452_s3] ss:$0 sm:$0xff]  ;;  %s2137_s3 = smov [#allocation11]  }
  0x54   :  { %1849 = vmatprep.subr.mxu0 %v2135_v28  ;;  %s1693_s5 = sshll.u32 %s2137_s3, 4  ;;  %s1694_s5 = int_to_ptr.vmem [resolvable:$true] %s1693_s5 }
  0x55   :  { %1838 = vmatmul.mubr.msk.f32.vlgmr.msra.gmra.mrb[0].mxu1 %vm109_vm0, %v2258_v14  ;;  %s2075_s30 = scalar_lea.vmem %s1694_s5, 1024  ;;  %p2080_p5 = scmp.lt.s32.totalorder %s1694_s5, %s1694_s5 }
  0x56   :  { %1818 = vmatmul.mubr.msk.f32.vlgmr.msra.gmra.mrb[0].mxu0 %vm109_vm0, %v83_v15  ;;  %1840 = vmatprep.mubr.msk.f32.mxu1 %vm109_vm0, %v2260_v16  ;;  %p2076_p4 = scmp.ne.s32.totalorder %s1694_s5, %s2075_s30  ;;  %p2081_p6 = scmp.lt.s32.totalorder %s2075_s30, %s2075_s30 }
  0x57   :  { %1820 = vmatprep.mubr.msk.f32.mxu0 %vm109_vm0, %v84_v17 }
  0x58   :  { %p2082_p7 = por %p2081_p6, %p2080_p5 }
  0x59   :  { %1841 = vmatmul.mubr.msk.f32.gmra.mrb[2].mxu1 %vm109_vm0, %v2267_v18 }
  0x5a   :  { %1821 = vmatmul.mubr.msk.f32.gmra.mrb[2].mxu0 %vm109_vm0, %v85_v19  ;;  %1843 = vmatprep.mubr.msk.f32.mxu1 %vm109_vm0, %v2270_v20  ;;  %p2083_p8 = pnand %p2082_p7, %p2076_p4 }
  0x5b   :  { %1823 = vmatprep.mubr.msk.f32.mxu0 %vm109_vm0, %v86_v21 }
  0x5d   :  { %1844 = vmatmul.mubr.msk.f32.gmra.mrb[4].mxu1 %vm109_vm0, %v2277_v22 }
  0x5e   :  { %1824 = vmatmul.mubr.msk.f32.gmra.mrb[4].mxu0 %vm109_vm0, %v87_v23  ;;  %1846 = vmatprep.mubr.msk.f32.mxu1 %vm109_vm0, %v2280_v24 }
  0x5f   :  { %1826 = vmatprep.mubr.msk.f32.mxu0 %vm109_vm0, %v88_v25 }
  0x61   :  { %1847 = vmatmul.mubr.msk.f32.gmra.mrb[6].mxu1 %vm109_vm0, %v2287_v26 }
  0x62   :  { %1827 = vmatmul.mubr.msk.f32.gmra.mrb[6].mxu0 %vm109_vm0, %v89_v27  ;;  %1856 = vmatprep.mubr.msk.f32.mxu1 %vm2136_vm1, %v2135_v28 }
  0x63   :  { %1851 = vmatprep.mubr.msk.f32.mxu0 %vm2136_vm1, %v2135_v28 }
 0x128   :  { %v1839_v31 = vpop.f32.mrb[0].mxu1 }
 0x129   :  { %v346_v32 = vadd.f32 %v1839_v31, %v1720_v29  ;;  %v340_v33 = vpop.f32.mrb[1].mxu1  ;;  %v1819_v34 = vpop.f32.mrb[0].mxu0 }
 0x12a   :  { %v341_v35 = vadd.f32 %v1720_v29, %v340_v33  ;;  %v206_v36 = vadd.f32 %v1819_v34, %v1711_v30  ;;  %v200_v37 = vpop.f32.mrb[1].mxu0 }
 0x12b   :  { %1855 = vmatpush3.xpose.msk.msra.mxu1 %vm109_vm0, %v346_v32  ;;  %v201_v38 = vadd.f32 %v1711_v30, %v200_v37 }
 0x12c   :  { %v1842_v39 = vpop.f32.mrb[2].mxu1  ;;  %1850 = vmatpush3.xpose.msk.msra.mxu0 %vm109_vm0, %v341_v35  ;;  %1864 = vmatprep.subr.mxu1 %v2135_v28 }
 0x12d   :  { %v356_v40 = vadd.f32 %v1842_v39, %v1720_v29  ;;  %v350_v41 = vpop.f32.mrb[3].mxu1  ;;  %v1822_v42 = vpop.f32.mrb[2].mxu0  ;;  %1859 = vmatprep.subr.mxu0 %v2135_v28 }
 0x12e   :  { %v351_v43 = vadd.f32 %v1720_v29, %v350_v41  ;;  %1857 = vmatmul.mubr.msk.f32.vlgmr.msra.gmra.mrb[8].mxu1 %vm109_vm0, %v206_v36  ;;  %v216_v44 = vadd.f32 %v1822_v42, %v1711_v30  ;;  %v210_v45 = vpop.f32.mrb[3].mxu0 }
 0x12f   :  { %1852 = vmatmul.mubr.msk.f32.vlgmr.msra.gmra.mrb[8].mxu0 %vm109_vm0, %v201_v38  ;;  %1865 = vmatpush3.xpose.msk.msra.mxu1 %vm109_vm0, %v356_v40  ;;  %v211_v46 = vadd.f32 %v1711_v30, %v210_v45 }
 0x130   :  { %v1845_v47 = vpop.f32.mrb[4].mxu1  ;;  %1860 = vmatpush3.xpose.msk.msra.mxu0 %vm109_vm0, %v351_v43  ;;  %1866 = vmatprep.mubr.msk.f32.mxu1 %vm2136_vm1, %v2135_v28 }
 0x131   :  { %v366_v48 = vadd.f32 %v1845_v47, %v1720_v29  ;;  %v360_v49 = vpop.f32.mrb[5].mxu1  ;;  %1861 = vmatprep.mubr.msk.f32.mxu0 %vm2136_vm1, %v2135_v28  ;;  %v1825_v50 = vpop.f32.mrb[4].mxu0  ;;  %1869 = vmatprep.subr.mxu0 %v2135_v28 }
 0x132   :  { %v361_v51 = vadd.f32 %v1720_v29, %v360_v49  ;;  %1867 = vmatmul.mubr.msk.f32.vlgmr.msra.gmra.mrb[10].mxu1 %vm109_vm0, %v216_v44  ;;  %v226_v52 = vadd.f32 %v1825_v50, %v1711_v30  ;;  %v220_v53 = vpop.f32.mrb[5].mxu0  ;;  %1874 = vmatprep.subr.mxu1 %v2135_v28 }
 0x133   :  { %1862 = vmatmul.mubr.msk.f32.vlgmr.msra.gmra.mrb[10].mxu0 %vm109_vm0, %v211_v46  ;;  %v221_v54 = vadd.f32 %v1711_v30, %v220_v53  ;;  %1875 = vmatpush3.xpose.msk.msra.mxu1 %vm109_vm0, %v366_v48 }
 0x134   :  { %v1848_v55 = vpop.f32.mrb[6].mxu1  ;;  %1870 = vmatpush3.xpose.msk.msra.mxu0 %vm109_vm0, %v361_v51  ;;  %1871 = vmatprep.mubr.msk.f32.mxu0 %vm2136_vm1, %v2135_v28 }
 0x135   :  { %v376_v56 = vadd.f32 %v1848_v55, %v1720_v29  ;;  %v370_v57 = vpop.f32.mrb[7].mxu1  ;;  %v1828_v58 = vpop.f32.mrb[6].mxu0  ;;  %1879 = vmatprep.subr.mxu0 %v2135_v28  ;;  %1876 = vmatprep.mubr.msk.f32.mxu1 %vm2136_vm1, %v2135_v28 }
 0x136   :  { %v371_v59 = vadd.f32 %v1720_v29, %v370_v57  ;;  %v236_v60 = vadd.f32 %v1828_v58, %v1711_v30  ;;  %v230_v61 = vpop.f32.mrb[7].mxu0  ;;  %1877 = vmatmul.mubr.msk.f32.vlgmr.msra.gmra.mrb[12].mxu1 %vm109_vm0, %v226_v52  ;;  %1884 = vmatprep.subr.mxu1 %v2135_v28 }
 0x137   :  { %1872 = vmatmul.mubr.msk.f32.vlgmr.msra.gmra.mrb[12].mxu0 %vm109_vm0, %v221_v54  ;;  %v231_v62 = vadd.f32 %v1711_v30, %v230_v61  ;;  %1885 = vmatpush3.xpose.msk.msra.mxu1 %vm109_vm0, %v376_v56 }
 0x138   :  { %1880 = vmatpush3.xpose.msk.msra.mxu0 %vm109_vm0, %v371_v59  ;;  %1881 = vmatprep.mubr.msk.f32.mxu0 %vm2136_vm1, %v2135_v28 }
 0x139   :  { %1886 = vmatprep.mubr.msk.f32.mxu1 %vm2136_vm1, %v2135_v28  ;;  %1889 = vmatprep.subr.mxu0 %v2135_v28 }
 0x13a   :  { %1887 = vmatmul.mubr.msk.f32.vlgmr.msra.gmra.mrb[14].mxu1 %vm109_vm0, %v236_v60  ;;  %1894 = vmatprep.subr.mxu1 %v2135_v28 }
 0x13b   :  { %1882 = vmatmul.mubr.msk.f32.vlgmr.msra.gmra.mrb[14].mxu0 %vm109_vm0, %v231_v62  ;;  %1895 = vmatpush3.msra.mxu1 %v2258_v14 }
 0x13c   :  { %1890 = vmatpush3.msra.mxu0 %v2253_v11  ;;  %1891 = vmatprep.mubr.msk.f32.mxu0 %vm2136_vm1, %v2135_v28 }
 0x13d   :  { %1896 = vmatprep.mubr.msk.f32.mxu1 %vm2136_vm1, %v2135_v28  ;;  %1899 = vmatprep.subr.mxu0 %v2135_v28 }
 0x13e   :  { %1904 = vmatprep.subr.mxu1 %v2135_v28 }
 0x201   :  { %v527_v63 = vpop.f32.mrb[8].mxu1 }
 0x202   :  { %v451_v0 = vpop.f32.mrb[8].mxu0  ;;  %v1858_v1 = vpop.f32.mrb[9].mxu1  ;;  %v991_v8 = vsel %vm987_vm2, %v527_v63, -inf }
 0x203   :  { %v988_v2 = vsel %vm987_vm2, %v451_v0, -inf  ;;  %v1853_v3 = vpop.f32.mrb[9].mxu0 }
 0x204   :  { %989 = vmax.xlane.f32.xlu0 %v988_v2 }
 0x205   :  { %v679_v4 = vpop.f32.mrb[10].mxu1 }
 0x206   :  { %v997_v5 = vsel %vm987_vm2, %v679_v4, -inf  ;;  %v603_v6 = vpop.f32.mrb[10].mxu0  ;;  %v1868_v7 = vpop.f32.mrb[11].mxu1 }
 0x207   :  { %998 = vmax.xlane.f32.xlu1 %v997_v5  ;;  %v1863_v9 = vpop.f32.mrb[11].mxu0  ;;  %v994_v12 = vsel %vm987_vm2, %v603_v6, -inf }
 0x208   :  { %992 = vmax.xlane.f32.xlu0 %v991_v8 }
 0x209   :  { %v831_v10 = vpop.f32.mrb[12].mxu1 }
 0x20a   :  { %v755_v11 = vpop.f32.mrb[12].mxu0  ;;  %v1878_v13 = vpop.f32.mrb[13].mxu1  ;;  %v1003_v17 = vsel %vm987_vm2, %v831_v10, -inf }
 0x20b   :  { %995 = vmax.xlane.f32.xlu1 %v994_v12  ;;  %v1000_v14 = vsel %vm987_vm2, %v755_v11, -inf  ;;  %v1873_v15 = vpop.f32.mrb[13].mxu0 }
 0x20c   :  { %1001 = vmax.xlane.f32.xlu0 %v1000_v14 }
 0x20d   :  { %v983_v19 = vpop.f32.mrb[14].mxu1 }
 0x20e   :  { %v907_v21 = vpop.f32.mrb[14].mxu0  ;;  %v1888_v23 = vpop.f32.mrb[15].mxu1  ;;  %v1009_v29 = vsel %vm987_vm2, %v983_v19, -inf }
 0x20f   :  { %1004 = vmax.xlane.f32.xlu1 %v1003_v17  ;;  %v1006_v25 = vsel %vm987_vm2, %v907_v21, -inf  ;;  %v1883_v27 = vpop.f32.mrb[15].mxu0 }
 0x210   :  { %1007 = vmax.xlane.f32.xlu0 %v1006_v25 }
 0x213   :  { %1010 = vmax.xlane.f32.xlu1 %v1009_v29 }
 0x291   :  { %v990_v30 = vpop.xlane.xlu0 %989 }
 0x292   :  { %v1012_v31 = vsub.f32 %v451_v0, %v990_v30 }
 0x294   :  { %v1020_v32 = vmul.f32 1.442695, %v1012_v31  ;;  %v999_v33 = vpop.xlane.xlu1 %998 }
 0x295   :  { %v1015_v34 = vsub.f32 %v679_v4, %v999_v33  ;;  %v993_v35 = vpop.xlane.xlu0 %992 }
 0x296   :  { %1955 = vpow2.f32 %v1020_v32  ;;  %v1013_v36 = vsub.f32 %v527_v63, %v993_v35 }
 0x297   :  { %v1026_v37 = vmul.f32 1.442695, %v1015_v34 }
 0x298   :  { %v1022_v38 = vmul.f32 1.442695, %v1013_v36  ;;  %v996_v39 = vpop.xlane.xlu1 %995 }
 0x299   :  { %v1014_v40 = vsub.f32 %v603_v6, %v996_v39  ;;  %v1002_v41 = vpop.xlane.xlu0 %1001 }
 0x29a   :  { %1957 = vpow2.f32 %v1022_v38  ;;  %v1016_v42 = vsub.f32 %v755_v11, %v1002_v41 }
 0x29b   :  { %v1024_v43 = vmul.f32 1.442695, %v1014_v40  ;;  %1959 = vpow2.f32 %v1026_v37 }
 0x29c   :  { %v1028_v44 = vmul.f32 1.442695, %v1016_v42  ;;  %v1005_v45 = vpop.xlane.xlu1 %1004 }
 0x29d   :  { %1961 = vpow2.f32 %v1024_v43  ;;  %v1017_v46 = vsub.f32 %v831_v10, %v1005_v45  ;;  %v1008_v47 = vpop.xlane.xlu0 %1007 }
 0x29e   :  { %v1018_v48 = vsub.f32 %v907_v21, %v1008_v47  ;;  %1963 = vpow2.f32 %v1028_v44 }
 0x29f   :  { %v1030_v49 = vmul.f32 1.442695, %v1017_v46 }
 0x2a0   :  { %v1956_v50 = vpop.eup %1955  ;;  %v1032_v51 = vmul.f32 1.442695, %v1018_v48  ;;  %v1011_v52 = vpop.xlane.xlu1 %1010 }
 0x2a1   :  { %1965 = vpow2.f32 %v1030_v49  ;;  %v1019_v53 = vsub.f32 %v983_v19, %v1011_v52  ;;  %v1036_v54 = vsel %vm987_vm2, %v1956_v50, 0.0 }
 0x2a2   :  { %1037 = vadd.xlane.f32.xlu0 %v1036_v54  ;;  %1967 = vpow2.f32 %v1032_v51 }
 0x2a3   :  { %v1034_v55 = vmul.f32 1.442695, %v1019_v53 }
 0x2a4   :  { %v1958_v56 = vpop.eup %1957 }
 0x2a5   :  { %1969 = vpow2.f32 %v1034_v55  ;;  %v1039_v57 = vsel %vm987_vm2, %v1958_v56, 0.0  ;;  %v1960_v58 = vpop.eup %1959 }
 0x2a6   :  { %1040 = vadd.xlane.f32.xlu1 %v1039_v57  ;;  %v1045_v62 = vsel %vm987_vm2, %v1960_v58, 0.0 }
 0x2a7   :  { %v1962_v59 = vpop.eup %1961 }
 0x2a8   :  { %v1042_v60 = vsel %vm987_vm2, %v1962_v59, 0.0  ;;  %v1964_v61 = vpop.eup %1963 }
 0x2a9   :  { %1043 = vadd.xlane.f32.xlu0 %v1042_v60  ;;  %v1048_v0 = vsel %vm987_vm2, %v1964_v61, 0.0 }
 0x2aa   :  { %1046 = vadd.xlane.f32.xlu1 %v1045_v62 }
 0x2ab   :  { %v1966_v63 = vpop.eup %1965 }
 0x2ac   :  { %v1051_v1 = vsel %vm987_vm2, %v1966_v63, 0.0  ;;  %v2363_v2 = vpop.eup %1967 }
 0x2ad   :  { %1049 = vadd.xlane.f32.xlu0 %v1048_v0  ;;  %v1054_v4 = vsel %vm987_vm2, %v2363_v2, 0.0 }
 0x2ae   :  { %1052 = vadd.xlane.f32.xlu1 %v1051_v1 }
 0x2af   :  { %v2365_v3 = vpop.eup %1969 }
 0x2b0   :  { %v1057_v5 = vsel %vm987_vm2, %v2365_v3, 0.0 }
 0x2b1   :  { %1055 = vadd.xlane.f32.xlu0 %v1054_v4 }
 0x2b2   :  { %1058 = vadd.xlane.f32.xlu1 %v1057_v5 }
 0x32f   :  { %v1038_v6 = vpop.xlane.xlu0 %1037 }
 0x330   :  { %1971 = vrcp.f32 %v1038_v6 }
 0x333   :  { %v1041_v7 = vpop.xlane.xlu1 %1040 }
 0x334   :  { %1973 = vrcp.f32 %v1041_v7 }
 0x336   :  { %v1044_v8 = vpop.xlane.xlu0 %1043 }
 0x337   :  { %1975 = vrcp.f32 %v1044_v8  ;;  %v1047_v9 = vpop.xlane.xlu1 %1046 }
 0x338   :  { %1977 = vrcp.f32 %v1047_v9 }
 0x33a   :  { %v1972_v10 = vpop.eup %1971  ;;  %v1050_v11 = vpop.xlane.xlu0 %1049 }
 0x33b   :  { %v1061_v12 = vmul.f32 %v1972_v10, %v1956_v50  ;;  %1979 = vrcp.f32 %v1050_v11  ;;  %v1053_v13 = vpop.xlane.xlu1 %1052 }
 0x33c   :  { %1981 = vrcp.f32 %v1053_v13 }
 0x33d   :  { %1668 = vst.msk [vmem:[#allocation11] sm:$0xff] %vm987_vm2, %v1061_v12  ;;  %1892 = vmatmul.mubr.msk.f32.vlgmr.msra.gmra.mrb[16].mxu0 %vm987_vm2, %v1061_v12 }
 0x33e   :  { %v1974_v14 = vpop.eup %1973  ;;  %v1056_v15 = vpop.xlane.xlu0 %1055  ;;  %1900 = vmatpush3.msra.mxu0 %v2260_v16  ;;  %1901 = vmatprep.mubr.msk.f32.mxu0 %vm2136_vm1, %v2135_v28 }
 0x33f   :  { %v1063_v17 = vmul.f32 %v1974_v14, %v1958_v56  ;;  %1983 = vrcp.f32 %v1056_v15  ;;  %v1059_v19 = vpop.xlane.xlu1 %1058  ;;  %1909 = vmatprep.subr.mxu0 %v2135_v28 }
 0x340   :  { %1985 = vrcp.f32 %v1059_v19 }
 0x341   :  { %v1976_v21 = vpop.eup %1975  ;;  %1669 = vst.msk [vmem:[#allocation11 + $0x8] sm:$0xff] %vm987_vm2, %v1063_v17  ;;  %1897 = vmatmul.mubr.msk.f32.vlgmr.msra.gmra.mrb[16].mxu1 %vm987_vm2, %v1063_v17 }
 0x342   :  { %v1978_v23 = vpop.eup %1977  ;;  %v1065_v25 = vmul.f32 %v1976_v21, %v1962_v59  ;;  %1905 = vmatpush3.msra.mxu1 %v2267_v18  ;;  %1906 = vmatprep.mubr.msk.f32.mxu1 %vm2136_vm1, %v2135_v28 }
 0x343   :  { %v1067_v16 = vmul.f32 %v1978_v23, %v1960_v58  ;;  %1914 = vmatprep.subr.mxu1 %v2135_v28 }
 0x344   :  { %1670 = vst.msk [vmem:[#allocation11 + $0x10] sm:$0xff] %vm987_vm2, %v1065_v25  ;;  %1902 = vmatmul.mubr.msk.f32.vlgmr.msra.gmra.mrb[18].mxu0 %vm987_vm2, %v1065_v25 }
 0x345   :  { %v1980_v27 = vpop.eup %1979  ;;  %1671 = vst.msk [vmem:[#allocation11 + $0x18] sm:$0xff] %vm987_vm2, %v1067_v16  ;;  %1907 = vmatmul.mubr.msk.f32.vlgmr.msra.gmra.mrb[18].mxu1 %vm987_vm2, %v1067_v16  ;;  %1910 = vmatpush3.msra.mxu0 %v2270_v20 }
 0x346   :  { %v1982_v29 = vpop.eup %1981  ;;  %v1069_v30 = vmul.f32 %v1980_v27, %v1964_v61  ;;  %1911 = vmatprep.mubr.msk.f32.mxu0 %vm2136_vm1, %v2135_v28  ;;  %1915 = vmatpush3.msra.mxu1 %v2277_v22 }
 0x347   :  { %v1071_v18 = vmul.f32 %v1982_v29, %v1966_v63  ;;  %1916 = vmatprep.mubr.msk.f32.mxu1 %vm2136_vm1, %v2135_v28  ;;  %1919 = vmatprep.subr.mxu0 %v2135_v28 }
 0x348   :  { %1672 = vst.msk [vmem:[#allocation11 + $0x20] sm:$0xff] %vm987_vm2, %v1069_v30  ;;  %1912 = vmatmul.mubr.msk.f32.vlgmr.msra.gmra.mrb[20].mxu0 %vm987_vm2, %v1069_v30  ;;  %1924 = vmatprep.subr.mxu1 %v2135_v28 }
 0x349   :  { %v1984_v20 = vpop.eup %1983  ;;  %1673 = vst.msk [vmem:[#allocation11 + $0x28] sm:$0xff] %vm987_vm2, %v1071_v18  ;;  %1917 = vmatmul.mubr.msk.f32.vlgmr.msra.gmra.mrb[20].mxu1 %vm987_vm2, %v1071_v18  ;;  %1920 = vmatpush3.msra.mxu0 %v2280_v24 }
 0x34a   :  { %v1986_v22 = vpop.eup %1985  ;;  %v1073_v31 = vmul.f32 %v1984_v20, %v2363_v2  ;;  %1921 = vmatprep.mubr.msk.f32.mxu0 %vm2136_vm1, %v2135_v28  ;;  %1925 = vmatpush3.msra.mxu1 %v2287_v26 }
 0x34b   :  { %v1075_v32 = vmul.f32 %v1986_v22, %v2365_v3  ;;  %1926 = vmatprep.mubr.msk.f32.mxu1 %vm2136_vm1, %v2135_v28 }
 0x34c   :  { %1674 = vst.msk [vmem:[#allocation11 + $0x30] sm:$0xff] %vm987_vm2, %v1073_v31  ;;  %1922 = vmatmul.mubr.msk.f32.vlgmr.msra.gmra.mrb[22].mxu0 %vm987_vm2, %v1073_v31 }
 0x34d   :  { %1675 = vst.msk [vmem:[#allocation11 + $0x38] sm:$0xff] %vm987_vm2, %v1075_v32  ;;  %1927 = vmatmul.mubr.msk.f32.vlgmr.msra.gmra.mrb[22].mxu1 %vm987_vm2, %v1075_v32 }
 0x34e   :  { %2086 = shalt.err (!%p2083_p8)
}
 0x34f   :  { %s2087_s10 = scalar_lea.hbm %s2456_s7, 1024 }
 0x350   :  { %p2088_p9 = scmp.ne.s32.totalorder %s2456_s7, %s2087_s10  ;;  %p2091_p10 = scmp.lt.u32.totalorder %s2087_s10, %s2456_s7 }
 0x352   :  { %p2093_p11 = pnand %p2091_p10, %p2088_p9 }
 0x354   :  { %2096 = shalt.err (!%p2093_p11)
}
 0x355   :  { %1699 = dma.vmem_to_hbm [thread:$0]  %s1694_s5, 1024, %s2456_s7, [#allocation12], %s2131_s13, %s2131_s13, %s2132_s14  }
 0x356   :  { %s2138_s7 = smov [#allocation10]  }
 0x357   :  { %s1681_s17 = sshll.u32 %s2138_s7, 4  ;;  %s1682_s17 = int_to_ptr.vmem [resolvable:$true] %s1681_s17 }
 0x358   :  { %s2097_s18 = scalar_lea.vmem %s1682_s17, 1024  ;;  %p2102_p13 = scmp.lt.s32.totalorder %s1682_s17, %s1682_s17 }
 0x359   :  { %p2098_p12 = scmp.ne.s32.totalorder %s1682_s17, %s2097_s18  ;;  %p2103_p0 = scmp.lt.s32.totalorder %s2097_s18, %s2097_s18 }
 0x35b   :  { %p2104_p1 = por %p2103_p0, %p2102_p13 }
 0x35d   :  { %p2105_p2 = pnand %p2104_p1, %p2098_p12 }
 0x410   :  { %v1145_v24 = vpop.f32.mrb[16].mxu0 }
 0x411   :  { %1660 = vst.msk [vmem:[#allocation10] sm:$0xff] %vm109_vm0, %v1145_v24  ;;  %v1893_v26 = vpop.f32.mrb[17].mxu0 }
 0x414   :  { %v1218_v28 = vpop.f32.mrb[16].mxu1 }
 0x415   :  { %1661 = vst.msk [vmem:[#allocation10 + $0x8] sm:$0xff] %vm109_vm0, %v1218_v28  ;;  %v1898_v33 = vpop.f32.mrb[17].mxu1 }
 0x417   :  { %v1291_v34 = vpop.f32.mrb[18].mxu0 }
 0x418   :  { %1662 = vst.msk [vmem:[#allocation10 + $0x10] sm:$0xff] %vm109_vm0, %v1291_v34  ;;  %v1903_v35 = vpop.f32.mrb[19].mxu0  ;;  %v1364_v36 = vpop.f32.mrb[18].mxu1 }
 0x419   :  { %1663 = vst.msk [vmem:[#allocation10 + $0x18] sm:$0xff] %vm109_vm0, %v1364_v36  ;;  %v1908_v37 = vpop.f32.mrb[19].mxu1 }
 0x41b   :  { %v1437_v38 = vpop.f32.mrb[20].mxu0 }
 0x41c   :  { %1664 = vst.msk [vmem:[#allocation10 + $0x20] sm:$0xff] %vm109_vm0, %v1437_v38  ;;  %v1913_v39 = vpop.f32.mrb[21].mxu0  ;;  %v1510_v40 = vpop.f32.mrb[20].mxu1 }
 0x41d   :  { %1665 = vst.msk [vmem:[#allocation10 + $0x28] sm:$0xff] %vm109_vm0, %v1510_v40  ;;  %v1918_v41 = vpop.f32.mrb[21].mxu1 }
 0x41f   :  { %v1583_v42 = vpop.f32.mrb[22].mxu0 }
 0x420   :  { %1666 = vst.msk [vmem:[#allocation10 + $0x30] sm:$0xff] %vm109_vm0, %v1583_v42  ;;  %v1923_v43 = vpop.f32.mrb[23].mxu0  ;;  %v1656_v44 = vpop.f32.mrb[22].mxu1 }
 0x421   :  { %1667 = vst.msk [vmem:[#allocation10 + $0x38] sm:$0xff] %vm109_vm0, %v1656_v44  ;;  %v1928_v45 = vpop.f32.mrb[23].mxu1 }
 0x422   :  { %2108 = shalt.err (!%p2105_p2)
}
 0x423   :  { %s2109_s21 = scalar_lea.hbm %s2455_s6, 1024 }
 0x424   :  { %p2110_p3 = scmp.ne.s32.totalorder %s2455_s6, %s2109_s21  ;;  %p2113_p4 = scmp.lt.u32.totalorder %s2109_s21, %s2455_s6 }
 0x426   :  { %p2115_p5 = pnand %p2113_p4, %p2110_p3 }
 0x428   :  { %2118 = shalt.err (!%p2115_p5)
}
 0x429   :  { %1687 = dma.vmem_to_hbm [thread:$0]  %s1682_s17, 1024, %s2455_s6, [#allocation4], %s2131_s13, %s2131_s13, %s2132_s14  }
 0x42a   :  { %2125 = dma.done.wait [#allocation4], 1024  }
 0x42b   :  { %2126 = vsyncadd [#allocation4], 4294966272 }
 0x42c   :  { %2127 = dma.done.wait [#allocation12], 1024  }
 0x42d   :  { %2128 = vsyncadd [#allocation12], 4294966272 }
 0x42e   :  { %1706 = vsyncpa [#allocation3], 1 }
 0x42f   :  { %1707 = vsyncpa [#allocation6], 1 }
 0x430   :  { %1708 = vsyncpa [#allocation9], 1 }
 0x431   :  { %1709 = vsyncpa [#allocation4], 1 }
 0x432   :  { %1710 = vsyncpa [#allocation12], 1 }

</bundles_post_ra>
